<compile_context>
chip_gen: v5e
topology: v5e:2x2
jax: 0.10.0
libtpu: 0.0.40
codegen_flags: <defaults>
</compile_context>

<pallas_src>
import jax
import jax.numpy as jnp
from jax.experimental import pallas as pl
from jax.experimental.pallas import tpu as pltpu


def _round_up(x, m):
    return ((x + m - 1) // m) * m


def _vmem_capacity_bytes():
    try:
        return int(pltpu.get_tpu_info().vmem_capacity_bytes)
    except Exception:
        return 64 * 1024 * 1024  # conservative default (v7x per-TensorCore)


def _choose_tiles(S, D, g, max_len, itemsize, budget_bytes):
    """Pick (tq, tkw).  Prefer wide key tiles (amortizes per-row loop overhead),
    then tall query tiles (fewer grid steps), subject to the VMEM budget."""
    unit_k = 8 * g                      # tkw must keep tkw//g a multiple of 8
    sq_cap = _round_up(S, 8)
    sk_cap = _round_up(S, unit_k)
    tq_cands = sorted({t for t in (512, 256, 128, 64, 32, 16, 8) if t <= sq_cap}
                      | {sq_cap}, reverse=True)
    tk_cands = sorted({t for t in (4096, 2048, 1024, 512, 256, 128, 64, 32, 16, 8)
                       if t % unit_k == 0 and t <= sk_cap} | {sk_cap}, reverse=True)
    fallback = (tq_cands[-1], tk_cands[-1])
    for tkw in tk_cands:
        sk_pad = _round_up(S, tkw)
        for tq in tq_cands:
            sq_pad = _round_up(S, tq)
            tab_rows = max(0, sq_pad - max_len) + (max_len - 1) + sk_pad + 2 * g + 16
            tab_bytes = 2 * tab_rows * g * D * itemsize      # double-buffered table
            out_block = tq * tkw * D * itemsize              # one output block
            temps = 2 * tkw * D * itemsize                   # per-row copy temporaries
            if 2 * out_block + tab_bytes + temps <= budget_bytes:
                return tq, tkw
    return fallback


def _make_kernel(tq, tkw, g, c_pad):
    tkw_g = tkw // g
    shift = (g - 1).bit_length()        # log2(g); g is always a power of two

    def kernel(tab_ref, out_ref):
        # tab_ref: (g, vq, g*D) residue-partitioned, g-folded, flipped, padded
        #          table (constant block index -> DMA'd once, VMEM resident).
        # out_ref: (tq, tkw//g, g*D) folded, lane-dense output tile.
        qi = pl.program_id(0)
        kj = pl.program_id(1)
        # Flipped-table row index for output row i_local = 0, key column 0 of
        # this tile:  s(i_local) = base - i_local  (always >= 0 by padding).
        base = c_pad + kj * tkw - qi * tq

        @pl.loop(0, tq)
        def _(i_local):
            s = base - i_local
            # Row i of the output is the contiguous slice flipped[s : s + tkw];
            # in the g-folded table that is rows s, s+g, ... -> one scalar index
            # (residue) + one contiguous sublane slice.  No relayout needed.
            out_ref[i_local] = tab_ref[s & (g - 1), pl.ds(s >> shift, tkw_g), :]

    return kernel


def relative_positional_embedding(x, table, max_len):
    """x: (B, S) int tokens (only the shape is used); table: (2*max_len-1, D)."""
    B, S = x.shape
    V, D = table.shape
    assert V == 2 * max_len - 1
    # PyTorch nn.Embedding would raise on out-of-range indices; mirror that.
    assert S <= max_len, f"seq_len={S} must be <= max_len={max_len}"

    dtype = table.dtype
    itemsize = jnp.dtype(dtype).itemsize

    # Fold factor: pack g consecutive key positions into one 128-lane row so the
    # output block's last dim is lane-dense.
    if D < 128 and 128 % D == 0:
        g = 128 // D
    else:
        g = 1
        # TODO(synk): for D that neither divides nor is a multiple of 128 the
        # stores are lane-masked; could pad D to the next divisor of 128.

    cap = _vmem_capacity_bytes()
    budget = int(cap * 0.45)                      # per-step working-set target
    tq, tkw = _choose_tiles(S, D, g, max_len, itemsize, budget)
    tkw_g = tkw // g

    sq_pad = _round_up(S, tq)
    sk_pad = _round_up(S, tkw)

    # --- flipped / padded / g-folded / residue-partitioned table -------------
    # flipped[k] = table[V-1-k];  out[i, j, :] = flipped[(max_len-1) - i + j].
    # A front pad of `front` rows keeps s = c_pad - i + j >= 0 for padded rows.
    front = max(0, sq_pad - max_len)
    c_pad = max_len - 1 + front
    r_needed = c_pad + sk_pad                     # folded rows we may index
    r_rows = max(r_needed, front + V)
    vq = _round_up(-(-r_rows // g), 8)            # rows per residue partition
    vg_rows = vq * g
    fp_rows = vg_rows + g                         # folding reads g consecutive rows

    flipped = table[::-1, :]
    fp = jnp.zeros((fp_rows, D), dtype).at[front:front + V, :].set(flipped)
    # folded[r, k*D + d] = fp[r + k, d]
    folded = jnp.concatenate([fp[k:k + vg_rows, :] for k in range(g)], axis=1)
    # tab[p, q, :] = folded[q*g + p, :]
    tab = folded.reshape(vq, g, g * D).transpose(1, 0, 2)

    # --- VMEM accounting (double-buffered output block + resident table) -----
    out_block_bytes = tq * tkw * D * itemsize
    tab_bytes = g * vq * g * D * itemsize
    footprint = 2 * out_block_bytes + 2 * tab_bytes + 2 * tkw * D * itemsize
    vmem_limit = int(min(int(cap * 0.9),
                         max(32 * 1024 * 1024, footprint + 8 * 1024 * 1024)))

    kernel = _make_kernel(tq, tkw, g, c_pad)
    cost = pl.CostEstimate(flops=0, transcendentals=0,
                           bytes_accessed=sq_pad * sk_pad * D * itemsize + tab_bytes)

    slab = pl.pallas_call(
        kernel,
        out_shape=jax.ShapeDtypeStruct((sq_pad, sk_pad // g, g * D), dtype),
        grid_spec=pltpu.PrefetchScalarGridSpec(
            num_scalar_prefetch=0,
            grid=(sq_pad // tq, sk_pad // tkw),
            in_specs=[
                # Full (small) folded table; constant block index -> copied once.
                pl.BlockSpec((g, vq, g * D), lambda qi, kj: (0, 0, 0)),
            ],
            out_specs=pl.BlockSpec((tq, tkw_g, g * D), lambda qi, kj: (qi, kj, 0)),
        ),
        compiler_params=pltpu.CompilerParams(
            dimension_semantics=("parallel", "parallel"),
            vmem_limit_bytes=vmem_limit),
        cost_estimate=cost,
    )(tab)

    # (sq_pad, sk_pad/g, g*D) -> (sq_pad, sk_pad, D) is a contiguity-preserving
    # reshape; crop any tile padding.  The batch dimension is a pure broadcast
    # (the embedding never depends on x's values) -- keep it lazy downstream.
    slab = slab.reshape(sq_pad, sk_pad, D)[:S, :S, :]
    return jnp.broadcast_to(slab[None], (B, S, S, D))


if __name__ == "__main__":
    B, S = 2, 8
    d_model = 32
    max_len = 16
    vocab = 2 * max_len - 1

    key = jax.random.PRNGKey(0)
    k_tab, k_x = jax.random.split(key)

    # nn.Embedding default init: N(0, 1)
    table = jax.random.normal(k_tab, (vocab, d_model), dtype=jnp.float32)
    # token values are irrelevant to the forward pass (only the shape is used)
    x = jax.random.randint(k_x, (B, S), 0, 10, dtype=jnp.int32)

    out = relative_positional_embedding(x, table, max_len)
    out = jax.block_until_ready(out)

    # pure-JAX reference
    pos = jnp.arange(S, dtype=jnp.int32)
    dists = pos[:, None] - pos[None, :] + (max_len - 1)          # (S, S)
    ref = jnp.broadcast_to(table[dists], (B, S, S, d_model))     # (B, S, S, D)

    assert out.shape == (B, S, S, d_model), out.shape
    assert jnp.allclose(out, ref, atol=1e-6), "mismatch vs reference"

    print("KERNEL_OK")
</pallas_src>

<mosaic_0001>
module attributes {stable_mosaic.version = 11 : i64} {
  func.func @kernel(%arg0: i32, %arg1: i32, %arg2: memref<4x16x128xf32, #tpu.memory_space<vmem>>, %arg3: memref<8x8x128xf32, #tpu.memory_space<vmem>>) attributes {dimension_semantics = [#tpu.dimension_semantics<parallel>, #tpu.dimension_semantics<parallel>], iteration_bounds = array<i64: 1, 1>, scalar_prefetch = 0 : i64, scratch_operands = 0 : i64, tpu.core_type = #tpu.core_type<tc>, window_params = [{pipeline_mode = #tpu.pipeline_mode<synchronous>, transform_indices = @transform_0, window_bounds = array<i64: 4, 16, 128>}, {transform_indices = @transform_1, window_bounds = array<i64: 8, 8, 128>}]} {
    %c32_i32 = arith.constant 32 : i32
    %0 = arith.muli %arg1, %c32_i32 : i32
    %c15_i32 = arith.constant 15 : i32
    %1 = arith.addi %c15_i32, %0 : i32
    %c8_i32 = arith.constant 8 : i32
    %2 = arith.muli %arg0, %c8_i32 : i32
    %3 = arith.subi %1, %2 : i32
    %c0_i32 = arith.constant 0 : i32
    %c8_i32_0 = arith.constant 8 : i32
    %4 = arith.addi %c0_i32, %c8_i32_0 : i32
    %c1_i32 = arith.constant 1 : i32
    scf.for %arg4 = %c0_i32 to %4 step %c1_i32  : i32 {
      %c1_i32_2 = arith.constant 1 : i32
      %5 = arith.muli %arg4, %c1_i32_2 : i32
      %c0_i32_3 = arith.constant 0 : i32
      %6 = arith.addi %c0_i32_3, %5 : i32
      %7 = arith.subi %3, %6 : i32
      %c3_i32 = arith.constant 3 : i32
      %8 = arith.andi %7, %c3_i32 : i32
      %c2_i32 = arith.constant 2 : i32
      %9 = arith.shrsi %7, %c2_i32 : i32
      %10 = arith.index_cast %8 : i32 to index
      %11 = arith.index_cast %9 : i32 to index
      %c0 = arith.constant 0 : index
      %12 = vector.load %arg2[%10, %11, %c0] : memref<4x16x128xf32, #tpu.memory_space<vmem>>, vector<1x8x128xf32>
      %13 = vector.shape_cast %12 : vector<1x8x128xf32> to vector<8x128xf32>
      %14 = arith.index_cast %6 : i32 to index
      %c0_4 = arith.constant 0 : index
      %c0_5 = arith.constant 0 : index
      %15 = vector.load %arg3[%14, %c0_4, %c0_5] : memref<8x8x128xf32, #tpu.memory_space<vmem>>, vector<1x8x128xf32>
      %16 = vector.shape_cast %15 : vector<1x8x128xf32> to vector<8x128xf32>
      %17 = vector.shape_cast %13 : vector<8x128xf32> to vector<1x8x128xf32>
      tpu.vector_store %arg3[%14, %c0_4, %c0_5], %17 {strides = array<i32>} : memref<8x8x128xf32, #tpu.memory_space<vmem>>, vector<1x8x128xf32>,
    }
    %c8_i32_1 = arith.constant 8 : i32
    return
  }
  func.func @transform_0(%arg0: i32, %arg1: i32) -> (i32, i32, i32) {
    %c0_i32 = arith.constant 0 : i32
    %c0_i32_0 = arith.constant 0 : i32
    %c0_i32_1 = arith.constant 0 : i32
    %c0_i32_2 = arith.constant 0 : i32
    return %c0_i32, %c0_i32_0, %c0_i32_1 : i32, i32, i32
  }
  func.func @transform_1(%arg0: i32, %arg1: i32) -> (i32, i32, i32) {
    %c0_i32 = arith.constant 0 : i32
    %c0_i32_0 = arith.constant 0 : i32
    return %arg0, %arg1, %c0_i32 : i32, i32, i32
  }
}

</mosaic_0001>

<bundles_post_ra>
// kernel: tpu_custom_call.1
= control target key start
LH: loop header
LB: loop body
LE: loop exit
PB: predicated region body
PF: predicated region fallthrough
CT: control target
= control target key end

     0   :  { %6 = vsyncpa [#allocation3], 0  ;;  %s174_s0 = inlined_call_operand.hbm [shape: f32[4,16,128], index: 0, kind: input, shape index: {}]   ;;  %s175_s1 = inlined_call_operand.hbm [shape: f32[8,8,128], index: 1, kind: output, shape index: {}]  }
   0x1   :  { %7 = vsyncpa [#allocation4], 0  ;;  %s12_s8 = sshll.u32 %s174_s0, 4  ;;  %s148_s9 = smov [#allocation2]   ;;  %s13_s8 = int_to_ptr.hbm [resolvable:$true] %s12_s8 }
   0x2   :  { %s14_s10 = sshll.u32 %s148_s9, 4  ;;  %s149_s11 = smov 128   ;;  %s15_s10 = int_to_ptr.vmem [resolvable:$true] %s14_s10 }
   0x3   :  { %s150_s12 = smov 8  }
   0x4   :  { %20 = dma.hbm_to_vmem [thread:$0]  %s13_s8, 1024, %s15_s10, [#allocation3], %s149_s11, %s149_s11, %s150_s12  }
   0x5   :  { %140 = dma.done.wait [#allocation3], 1024  }
   0x6   :  { %141 = vsyncadd [#allocation3], 4294966272  ;;  %s144_s13 = smov 0  }
   0x7 LB: > { %s35_s14 = ssub.s32 15, %s146_s13  ;;  %s75_s15 = sshll.u32 %s146_s13, 3  ;;  %s146_s13 = sphi %s144_s13, %s34_s13  }
   0x8   : > { %s36_s16 = sand.u32 3, %s35_s14  ;;  %s37_s0 = sshra.s32 %s35_s14, 2 }
   0x9   : > { %s74_s17 = sshll.u32 %s36_s16, 4  ;;  %s43_s20 = scalar_lea.vmem [#allocation5], %s75_s15 }
   0xa   : > { %s39_s18 = sadd.s32 %s74_s17, %s37_s0  ;;  %s34_s13 = sadd.s32 1, %s146_s13  }
   0xb   : > { %s40_s19 = scalar_lea.vmem [#allocation2], %s39_s18  ;;  %p31_p0 = scmp.ge.s32.totalorder %s34_s13, 8  }
   0xc   : > { %v41_v0 = vld [vmem:[%s40_s19] sm:$0xff]  ;;  %s51_s23 = sshll.u32 (%p31_p0), %s175_s1, 4  ;;  %s151_s24 = smov (%p31_p0), [#allocation5]   ;;  %s52_s23 = int_to_ptr.hbm [resolvable:$true] %s51_s23 }
   0xd   : > { %44 = vst [vmem:[%s43_s20] sm:$0xff] %v41_v0  ;;  %33 = sbr.rel (!%p31_p0) target bundleno = 7 (0x7), region = 37  ;;  %s49_s25 = sshll.u32 (%p31_p0), %s151_s24, 4  ;;  %s50_s25 = int_to_ptr.vmem [resolvable:$true] %s49_s25 }
   0xe   :  { %57 = dma.vmem_to_hbm [thread:$0]  (%p31_p0), %s50_s25, 1024, %s52_s23, [#allocation4], %s149_s11, %s149_s11, %s150_s12  }
  0x12   :  { %142 = dma.done.wait [#allocation4], 1024  }
  0x13   :  { %143 = vsyncadd [#allocation4], 4294966272 }
  0x14   :  { %62 = vsyncpa [#allocation3], 1 }
  0x15   :  { %63 = vsyncpa [#allocation4], 1 }

</bundles_post_ra>
